<compile_context>
chip_gen: v7x
topology: tpu7x:2x2x1
jax: 0.10.0
libtpu: 0.0.40
codegen_flags: <defaults>
</compile_context>

<pallas_src>
import functools

import jax
import jax.numpy as jnp
from jax.experimental import pallas as pl
from jax.experimental.pallas import tpu as pltpu

EPS = 1e-5


def _bn_fold(gamma, beta, running_mean, running_var, eps=EPS):
    scale = gamma / jnp.sqrt(running_var + eps)
    shift = beta - running_mean * scale
    return scale, shift


# ---------------------------------------------------------------------------
# Fused Pallas kernel (one batch element per grid step)
# ---------------------------------------------------------------------------

def _fast_guide_kernel(inp_ref, wgt_ref,
                       w1_ref, b1_ref,
                       we_w_ref, we_sh_ref,
                       w2_ref, c2_sh_ref,
                       w3_ref, b3_ref,
                       out_ref,
                       pad_ref,
                       *, W):
    """Layouts (per grid step):
      inp_ref/wgt_ref/out_ref : (1, C, S)   S = H*W on the lane axis
      w1_ref/w3_ref           : (C, 9*C)    im2col-folded 3x3 weights
      b1_ref/b3_ref           : (C, 1)
      we_w_ref                : (3C, C)     1x1 conv weight, BN scale folded in
      we_sh_ref               : (3C, 1)     folded BN shift
      w2_ref                  : (C, C)      1x1 conv weight, BN scale folded in
      c2_sh_ref               : (C, 1)      folded BN shift
      pad_ref (scratch)       : (C, S + 2*(W+1)) zero-haloed flat image
    """
    f32 = jnp.float32
    C = inp_ref.shape[1]
    S = inp_ref.shape[2]
    P = W + 1                                   # halo width in flat-lane space

    # Column-boundary masks (hoisted: computed once per kernel invocation).
    xs = jax.lax.broadcasted_iota(jnp.int32, (1, S), 1) % W
    mask_l = (xs >= 1).astype(f32)              # valid when sampling column x-1
    mask_r = (xs <= W - 2).astype(f32)          # valid when sampling column x+1

    # Zero the halo once; only the centre is overwritten per 3x3 conv.
    pad_ref[...] = jnp.zeros_like(pad_ref)

    def conv3x3(x, w, b):
        """x: (Cin,S) f32; w: (Cout, 9*Cin); b: (Cout,1). One im2col matmul."""
        pad_ref[:, P:P + S] = x
        taps = []
        for dy in (-1, 0, 1):
            for dx in (-1, 0, 1):
                sh = dy * W + dx
                t = pad_ref[:, P + sh:P + sh + S]      # shifted flat image
                if dx == -1:
                    t = t * mask_l
                elif dx == 1:
                    t = t * mask_r
                taps.append(t)
        col = jnp.concatenate(taps, axis=0)            # (9*Cin, S), sublane concat
        y = jnp.dot(w, col, preferred_element_type=f32) + b
        return jnp.maximum(y, 0.0)

    inp = inp_ref[0].astype(f32)                       # (C, S)
    wgt = wgt_ref[0].astype(f32)                       # (C, S)

    # conv1: 3x3 + bias + ReLU (on the guidance "weight" branch)
    wgt = conv3x3(wgt, w1_ref[...], b1_ref[...])

    # weight_expansion: 1x1 (BN scale pre-folded) + shift + ReLU   (C -> 3C)
    wexp = jnp.dot(we_w_ref[...], wgt, preferred_element_type=f32)
    wexp = jnp.maximum(wexp + we_sh_ref[...], 0.0)                   # (3C, S)

    # chunk along channels (sublane axis), sum of input*chunk_i
    ksum = wexp[0:C] + wexp[C:2 * C] + wexp[2 * C:3 * C]             # (C, S)
    # per-pixel channel mean of wexp == sum of ksum's C rows / (3C)
    avg = jnp.sum(ksum, axis=0, keepdims=True) * (1.0 / (3 * C))     # (1, S)
    mix = inp * ksum

    # conv2: 1x1 (BN scale pre-folded) + shift + ReLU, then * per-pixel mean
    y2 = jnp.dot(w2_ref[...], mix, preferred_element_type=f32)
    y2 = jnp.maximum(y2 + c2_sh_ref[...], 0.0) * avg

    # conv3: 3x3 + bias + ReLU
    out = conv3x3(y2, w3_ref[...], b3_ref[...])
    out_ref[0] = out.astype(out_ref.dtype)


# ---------------------------------------------------------------------------
# Wrapper
# ---------------------------------------------------------------------------

def fast_guide_forward(inp_nchw, weight_nchw, params):
    """FastGuide.forward(input, weight). Inputs/outputs are NCHW (f32)."""
    N, C, H, W = inp_nchw.shape
    S = H * W

    # NCHW with H*W flattened on lanes -- no transposes needed.
    inp = inp_nchw.reshape(N, C, S)
    wgt = weight_nchw.reshape(N, C, S)

    # Fold 3x3 weights into im2col layout: (Cout, ky, kx, Cin) -> (Cout, 9*Cin)
    w1 = jnp.transpose(params['conv1_w'], (0, 2, 3, 1)).reshape(C, 9 * C)
    w3 = jnp.transpose(params['conv3_w'], (0, 2, 3, 1)).reshape(C, 9 * C)
    b1 = params['conv1_b'].reshape(C, 1)
    b3 = params['conv3_b'].reshape(C, 1)

    # Inference-mode BN: fold the scale into the 1x1 conv weights (host side),
    # keep only the shift for the kernel.
    we_s, we_sh = _bn_fold(*params['we_bn'])
    c2_s, c2_sh = _bn_fold(*params['conv2_bn'])
    we_w = params['we_w'] * we_s[:, None]
    w2 = params['conv2_w'] * c2_s[:, None]

    kernel = functools.partial(_fast_guide_kernel, W=W)

    act_spec = pl.BlockSpec((1, C, S), lambda n: (n, 0, 0))
    const2 = lambda r, c: pl.BlockSpec((r, c), lambda n: (0, 0))  # noqa: E731

    out = pl.pallas_call(
        kernel,
        out_shape=jax.ShapeDtypeStruct((N, C, S), inp_nchw.dtype),
        grid=(N,),
        in_specs=[
            act_spec,                 # input
            act_spec,                 # weight (guidance)
            const2(C, 9 * C),         # w1
            const2(C, 1),             # b1
            const2(3 * C, C),         # we_w (scale folded)
            const2(3 * C, 1),         # we shift
            const2(C, C),             # w2 (scale folded)
            const2(C, 1),             # c2 shift
            const2(C, 9 * C),         # w3
            const2(C, 1),             # b3
        ],
        out_specs=act_spec,
        scratch_shapes=[pltpu.VMEM((C, S + 2 * (W + 1)), jnp.float32)],
        compiler_params=pltpu.CompilerParams(
            dimension_semantics=("parallel",)),
    )(inp, wgt,
      w1, b1,
      we_w, we_sh.reshape(3 * C, 1),
      w2, c2_sh.reshape(C, 1),
      w3, b3)

    return out.reshape(N, C, H, W)


# ---------------------------------------------------------------------------
# Synthetic parameters + pure-JAX reference (for a correctness gate)
# ---------------------------------------------------------------------------

def init_fast_guide_params(key, C):
    ks = jax.random.split(key, 6)
    p = {}
    p['conv1_w'] = jax.random.normal(ks[0], (C, C, 3, 3), jnp.float32) * 0.1
    p['conv1_b'] = jax.random.normal(ks[1], (C,), jnp.float32) * 0.1
    p['we_w'] = jax.random.normal(ks[2], (3 * C, C), jnp.float32) * 0.1
    p['we_bn'] = (jnp.ones((3 * C,)), jnp.zeros((3 * C,)),
                  jnp.zeros((3 * C,)), jnp.ones((3 * C,)))
    p['conv2_w'] = jax.random.normal(ks[3], (C, C), jnp.float32) * 0.1
    p['conv2_bn'] = (jnp.ones((C,)), jnp.zeros((C,)),
                     jnp.zeros((C,)), jnp.ones((C,)))
    p['conv3_w'] = jax.random.normal(ks[4], (C, C, 3, 3), jnp.float32) * 0.1
    p['conv3_b'] = jax.random.normal(ks[5], (C,), jnp.float32) * 0.1
    return p


def _reference_forward(inp, wgt, params):
    C = inp.shape[1]
    hp = jax.lax.Precision.HIGHEST

    def conv(x, w, pad):
        return jax.lax.conv_general_dilated(
            x, w, window_strides=(1, 1), padding=[(pad, pad), (pad, pad)],
            dimension_numbers=('NCHW', 'OIHW', 'NCHW'), precision=hp)

    we_s, we_sh = _bn_fold(*params['we_bn'])
    c2_s, c2_sh = _bn_fold(*params['conv2_bn'])

    w = jax.nn.relu(conv(wgt, params['conv1_w'], 1)
                    + params['conv1_b'][None, :, None, None])
    we = conv(w, params['we_w'][:, :, None, None], 0)
    we = jax.nn.relu(we * we_s[None, :, None, None]
                     + we_sh[None, :, None, None])
    mix = inp * (we[:, :C] + we[:, C:2 * C] + we[:, 2 * C:])
    avg = jnp.mean(we, axis=1, keepdims=True)
    y2 = conv(mix, params['conv2_w'][:, :, None, None], 0)
    y2 = jax.nn.relu(y2 * c2_s[None, :, None, None]
                     + c2_sh[None, :, None, None]) * avg
    out = conv(y2, params['conv3_w'], 1) + params['conv3_b'][None, :, None, None]
    return jax.nn.relu(out)


# ---------------------------------------------------------------------------

if __name__ == "__main__":
    N, C, H, W = 2, 8, 16, 16
    key = jax.random.PRNGKey(0)
    k_in, k_wg, k_par = jax.random.split(key, 3)

    inp = jax.random.normal(k_in, (N, C, H, W), jnp.float32)
    wgt = jax.random.normal(k_wg, (N, C, H, W), jnp.float32)
    params = init_fast_guide_params(k_par, C)

    out = jax.block_until_ready(jax.jit(fast_guide_forward)(inp, wgt, params))
    assert out.shape == (N, C, H, W), out.shape

    # Loose correctness gate against a pure-JAX/XLA reference (catches
    # structural bugs; tolerant of MXU accumulation-order differences and the
    # host-side BN-scale folding).
    ref = jax.block_until_ready(_reference_forward(inp, wgt, params))
    max_err = float(jnp.max(jnp.abs(out - ref)))
    scale = float(jnp.max(jnp.abs(ref))) + 1e-6
    if max_err > 0.05 * scale + 1e-3:
        raise AssertionError(
            f"kernel/reference mismatch: max_err={max_err:.3e}, scale={scale:.3e}")

    print("KERNEL_OK")
</pallas_src>

<mosaic_0001>
module attributes {stable_mosaic.version = 11 : i64} {
  func.func @_fast_guide_kernel(%arg0: i32, %arg1: memref<1x8x256xf32, #tpu.memory_space<vmem>>, %arg2: memref<1x8x256xf32, #tpu.memory_space<vmem>>, %arg3: memref<8x72xf32, #tpu.memory_space<vmem>>, %arg4: memref<8x1xf32, #tpu.memory_space<vmem>>, %arg5: memref<24x8xf32, #tpu.memory_space<vmem>>, %arg6: memref<24x1xf32, #tpu.memory_space<vmem>>, %arg7: memref<8x8xf32, #tpu.memory_space<vmem>>, %arg8: memref<8x1xf32, #tpu.memory_space<vmem>>, %arg9: memref<8x72xf32, #tpu.memory_space<vmem>>, %arg10: memref<8x1xf32, #tpu.memory_space<vmem>>, %arg11: memref<1x8x256xf32, #tpu.memory_space<vmem>>, %arg12: memref<8x290xf32, #tpu.memory_space<vmem>>) attributes {dimension_semantics = [#tpu.dimension_semantics<parallel>], iteration_bounds = array<i64: 2>, scalar_prefetch = 0 : i64, scratch_operands = 1 : i64, tpu.core_type = #tpu.core_type<tc>, window_params = [{transform_indices = @transform_0, window_bounds = array<i64: 1, 8, 256>}, {transform_indices = @transform_1, window_bounds = array<i64: 1, 8, 256>}, {pipeline_mode = #tpu.pipeline_mode<synchronous>, transform_indices = @transform_2, window_bounds = array<i64: 8, 72>}, {pipeline_mode = #tpu.pipeline_mode<synchronous>, transform_indices = @transform_3, window_bounds = array<i64: 8, 1>}, {pipeline_mode = #tpu.pipeline_mode<synchronous>, transform_indices = @transform_4, window_bounds = array<i64: 24, 8>}, {pipeline_mode = #tpu.pipeline_mode<synchronous>, transform_indices = @transform_5, window_bounds = array<i64: 24, 1>}, {pipeline_mode = #tpu.pipeline_mode<synchronous>, transform_indices = @transform_6, window_bounds = array<i64: 8, 8>}, {pipeline_mode = #tpu.pipeline_mode<synchronous>, transform_indices = @transform_7, window_bounds = array<i64: 8, 1>}, {pipeline_mode = #tpu.pipeline_mode<synchronous>, transform_indices = @transform_8, window_bounds = array<i64: 8, 72>}, {pipeline_mode = #tpu.pipeline_mode<synchronous>, transform_indices = @transform_9, window_bounds = array<i64: 8, 1>}, {transform_indices = @transform_10, window_bounds = array<i64: 1, 8, 256>}]} {
    %0 = tpu.iota {dimensions = array<i32: 1>} : vector<1x256xi32>
    %c16_i32 = arith.constant 16 : i32
    %c0_i32 = arith.constant 0 : i32
    %1 = arith.cmpi eq, %c16_i32, %c0_i32 : i32
    %c1_i32 = arith.constant 1 : i32
    %2 = arith.select %1, %c1_i32, %c16_i32 : i32
    %3 = vector.broadcast %2 : i32 to vector<1x256xi32>
    %4 = arith.remsi %0, %3 : vector<1x256xi32>
    %c0_i32_0 = arith.constant 0 : i32
    %5 = vector.broadcast %c0_i32_0 : i32 to vector<1x256xi32>
    %6 = arith.cmpi ne, %4, %5 : vector<1x256xi32>
    %c0_i32_1 = arith.constant 0 : i32
    %7 = vector.broadcast %c0_i32_1 : i32 to vector<1x256xi32>
    %8 = arith.cmpi slt, %4, %7 : vector<1x256xi32>
    %c0_i32_2 = arith.constant 0 : i32
    %9 = arith.cmpi slt, %2, %c0_i32_2 : i32
    %10 = vector.broadcast %9 : i1 to vector<1x256xi1>
    %11 = vector.broadcast %10 : vector<1x256xi1> to vector<1x256xi1>
    %12 = arith.xori %8, %11 : vector<1x256xi1>
    %13 = arith.andi %12, %6 : vector<1x256xi1>
    %14 = vector.broadcast %2 : i32 to vector<1x256xi32>
    %15 = arith.addi %4, %14 : vector<1x256xi32>
    %16 = arith.select %13, %15, %4 : vector<1x256xi1>, vector<1x256xi32>
    %c1_i32_3 = arith.constant 1 : i32
    %17 = vector.broadcast %c1_i32_3 : i32 to vector<1x256xi32>
    %18 = arith.cmpi sge, %16, %17 : vector<1x256xi32>
    %19 = arith.extui %18 : vector<1x256xi1> to vector<1x256xi32>
    %20 = arith.sitofp %19 : vector<1x256xi32> to vector<1x256xf32>
    %c14_i32 = arith.constant 14 : i32
    %21 = vector.broadcast %c14_i32 : i32 to vector<1x256xi32>
    %22 = arith.cmpi sle, %16, %21 : vector<1x256xi32>
    %23 = arith.extui %22 : vector<1x256xi1> to vector<1x256xi32>
    %24 = arith.sitofp %23 : vector<1x256xi32> to vector<1x256xf32>
    %cst = arith.constant 0.000000e+00 : f32
    %25 = vector.broadcast %cst : f32 to vector<8x290xf32>
    %c0 = arith.constant 0 : index
    %c0_4 = arith.constant 0 : index
    %26 = vector.load %arg12[%c0, %c0_4] : memref<8x290xf32, #tpu.memory_space<vmem>>, vector<8x290xf32>
    tpu.vector_store %arg12[%c0, %c0_4], %25 {strides = array<i32>} : memref<8x290xf32, #tpu.memory_space<vmem>>, vector<8x290xf32>,
    %c0_5 = arith.constant 0 : index
    %c0_6 = arith.constant 0 : index
    %c0_7 = arith.constant 0 : index
    %27 = vector.load %arg1[%c0_5, %c0_6, %c0_7] : memref<1x8x256xf32, #tpu.memory_space<vmem>>, vector<1x8x256xf32>
    %28 = vector.shape_cast %27 : vector<1x8x256xf32> to vector<8x256xf32>
    %c0_8 = arith.constant 0 : index
    %c0_9 = arith.constant 0 : index
    %c0_10 = arith.constant 0 : index
    %29 = vector.load %arg2[%c0_8, %c0_9, %c0_10] : memref<1x8x256xf32, #tpu.memory_space<vmem>>, vector<1x8x256xf32>
    %30 = vector.shape_cast %29 : vector<1x8x256xf32> to vector<8x256xf32>
    %c0_11 = arith.constant 0 : index
    %c0_12 = arith.constant 0 : index
    %31 = vector.load %arg3[%c0_11, %c0_12] : memref<8x72xf32, #tpu.memory_space<vmem>>, vector<8x72xf32>
    %c0_13 = arith.constant 0 : index
    %c0_14 = arith.constant 0 : index
    %32 = vector.load %arg4[%c0_13, %c0_14] : memref<8x1xf32, #tpu.memory_space<vmem>>, vector<8x1xf32>
    %c0_15 = arith.constant 0 : index
    %c17 = arith.constant 17 : index
    %33 = vector.load %arg12[%c0_15, %c17] : memref<8x290xf32, #tpu.memory_space<vmem>>, vector<8x256xf32>
    tpu.vector_store %arg12[%c0_15, %c17], %30 {strides = array<i32>} : memref<8x290xf32, #tpu.memory_space<vmem>>, vector<8x256xf32>,
    %c0_16 = arith.constant 0 : index
    %c0_17 = arith.constant 0 : index
    %34 = vector.load %arg12[%c0_16, %c0_17] : memref<8x290xf32, #tpu.memory_space<vmem>>, vector<8x256xf32>
    %35 = vector.broadcast %20 : vector<1x256xf32> to vector<8x256xf32>
    %36 = arith.mulf %34, %35 : vector<8x256xf32>
    %c0_18 = arith.constant 0 : index
    %c1 = arith.constant 1 : index
    %37 = vector.load %arg12[%c0_18, %c1] : memref<8x290xf32, #tpu.memory_space<vmem>>, vector<8x256xf32>
    %c0_19 = arith.constant 0 : index
    %c2 = arith.constant 2 : index
    %38 = vector.load %arg12[%c0_19, %c2] : memref<8x290xf32, #tpu.memory_space<vmem>>, vector<8x256xf32>
    %39 = vector.broadcast %24 : vector<1x256xf32> to vector<8x256xf32>
    %40 = arith.mulf %38, %39 : vector<8x256xf32>
    %c0_20 = arith.constant 0 : index
    %c16 = arith.constant 16 : index
    %41 = vector.load %arg12[%c0_20, %c16] : memref<8x290xf32, #tpu.memory_space<vmem>>, vector<8x256xf32>
    %42 = vector.broadcast %20 : vector<1x256xf32> to vector<8x256xf32>
    %43 = arith.mulf %41, %42 : vector<8x256xf32>
    %c0_21 = arith.constant 0 : index
    %c17_22 = arith.constant 17 : index
    %44 = vector.load %arg12[%c0_21, %c17_22] : memref<8x290xf32, #tpu.memory_space<vmem>>, vector<8x256xf32>
    %c0_23 = arith.constant 0 : index
    %c18 = arith.constant 18 : index
    %45 = vector.load %arg12[%c0_23, %c18] : memref<8x290xf32, #tpu.memory_space<vmem>>, vector<8x256xf32>
    %46 = vector.broadcast %24 : vector<1x256xf32> to vector<8x256xf32>
    %47 = arith.mulf %45, %46 : vector<8x256xf32>
    %c0_24 = arith.constant 0 : index
    %c32 = arith.constant 32 : index
    %48 = vector.load %arg12[%c0_24, %c32] : memref<8x290xf32, #tpu.memory_space<vmem>>, vector<8x256xf32>
    %49 = vector.broadcast %20 : vector<1x256xf32> to vector<8x256xf32>
    %50 = arith.mulf %48, %49 : vector<8x256xf32>
    %c0_25 = arith.constant 0 : index
    %c33 = arith.constant 33 : index
    %51 = vector.load %arg12[%c0_25, %c33] : memref<8x290xf32, #tpu.memory_space<vmem>>, vector<8x256xf32>
    %c0_26 = arith.constant 0 : index
    %c34 = arith.constant 34 : index
    %52 = vector.load %arg12[%c0_26, %c34] : memref<8x290xf32, #tpu.memory_space<vmem>>, vector<8x256xf32>
    %53 = vector.broadcast %24 : vector<1x256xf32> to vector<8x256xf32>
    %54 = arith.mulf %52, %53 : vector<8x256xf32>
    %55 = tpu.concatenate %36, %37, %40, %43, %44, %47, %50, %51, %54 in 0 : vector<8x256xf32>, vector<8x256xf32>, vector<8x256xf32>, vector<8x256xf32>, vector<8x256xf32>, vector<8x256xf32>, vector<8x256xf32>, vector<8x256xf32>, vector<8x256xf32> -> vector<72x256xf32>
    %cst_27 = arith.constant dense<0.000000e+00> : vector<8x256xf32>
    %56 = tpu.matmul %31, %55, %cst_27 {dimension_numbers = #tpu.dot_dimension_numbers<[1], [0], [0], [1], [0, 0, 1, 1], [], []>} : vector<8x72xf32>, vector<72x256xf32>, vector<8x256xf32> -> vector<8x256xf32>
    %57 = vector.broadcast %32 : vector<8x1xf32> to vector<8x256xf32>
    %58 = arith.addf %56, %57 : vector<8x256xf32>
    %cst_28 = arith.constant 0.000000e+00 : f32
    %59 = vector.broadcast %cst_28 : f32 to vector<8x256xf32>
    %60 = arith.maximumf %58, %59 : vector<8x256xf32>
    %c0_29 = arith.constant 0 : index
    %c0_30 = arith.constant 0 : index
    %61 = vector.load %arg5[%c0_29, %c0_30] : memref<24x8xf32, #tpu.memory_space<vmem>>, vector<24x8xf32>
    %cst_31 = arith.constant dense<0.000000e+00> : vector<24x256xf32>
    %62 = tpu.matmul %61, %60, %cst_31 {dimension_numbers = #tpu.dot_dimension_numbers<[1], [0], [0], [1], [0, 0, 1, 1], [], []>} : vector<24x8xf32>, vector<8x256xf32>, vector<24x256xf32> -> vector<24x256xf32>
    %c0_32 = arith.constant 0 : index
    %c0_33 = arith.constant 0 : index
    %63 = vector.load %arg6[%c0_32, %c0_33] : memref<24x1xf32, #tpu.memory_space<vmem>>, vector<24x1xf32>
    %64 = vector.broadcast %63 : vector<24x1xf32> to vector<24x256xf32>
    %65 = arith.addf %62, %64 : vector<24x256xf32>
    %cst_34 = arith.constant 0.000000e+00 : f32
    %66 = vector.broadcast %cst_34 : f32 to vector<24x256xf32>
    %67 = arith.maximumf %65, %66 : vector<24x256xf32>
    %68 = vector.extract_strided_slice %67 {offsets = [0, 0], sizes = [8, 256], strides = [1, 1]} : vector<24x256xf32> to vector<8x256xf32>
    %69 = vector.extract_strided_slice %67 {offsets = [8, 0], sizes = [8, 256], strides = [1, 1]} : vector<24x256xf32> to vector<8x256xf32>
    %70 = arith.addf %68, %69 : vector<8x256xf32>
    %71 = vector.extract_strided_slice %67 {offsets = [16, 0], sizes = [8, 256], strides = [1, 1]} : vector<24x256xf32> to vector<8x256xf32>
    %72 = arith.addf %70, %71 : vector<8x256xf32>
    %cst_35 = arith.constant dense<0.000000e+00> : vector<256xf32>
    %73 = vector.multi_reduction <add>, %72, %cst_35 [0] : vector<8x256xf32> to vector<256xf32>
    %74 = vector.shape_cast %73 : vector<256xf32> to vector<1x256xf32>
    %cst_36 = arith.constant 0.0416666679 : f32
    %75 = vector.broadcast %cst_36 : f32 to vector<1x256xf32>
    %76 = arith.mulf %74, %75 : vector<1x256xf32>
    %77 = arith.mulf %28, %72 : vector<8x256xf32>
    %c0_37 = arith.constant 0 : index
    %c0_38 = arith.constant 0 : index
    %78 = vector.load %arg7[%c0_37, %c0_38] : memref<8x8xf32, #tpu.memory_space<vmem>>, vector<8x8xf32>
    %cst_39 = arith.constant dense<0.000000e+00> : vector<8x256xf32>
    %79 = tpu.matmul %78, %77, %cst_39 {dimension_numbers = #tpu.dot_dimension_numbers<[1], [0], [0], [1], [0, 0, 1, 1], [], []>} : vector<8x8xf32>, vector<8x256xf32>, vector<8x256xf32> -> vector<8x256xf32>
    %c0_40 = arith.constant 0 : index
    %c0_41 = arith.constant 0 : index
    %80 = vector.load %arg8[%c0_40, %c0_41] : memref<8x1xf32, #tpu.memory_space<vmem>>, vector<8x1xf32>
    %81 = vector.broadcast %80 : vector<8x1xf32> to vector<8x256xf32>
    %82 = arith.addf %79, %81 : vector<8x256xf32>
    %cst_42 = arith.constant 0.000000e+00 : f32
    %83 = vector.broadcast %cst_42 : f32 to vector<8x256xf32>
    %84 = arith.maximumf %82, %83 : vector<8x256xf32>
    %85 = vector.broadcast %76 : vector<1x256xf32> to vector<8x256xf32>
    %86 = arith.mulf %84, %85 : vector<8x256xf32>
    %c0_43 = arith.constant 0 : index
    %c0_44 = arith.constant 0 : index
    %87 = vector.load %arg9[%c0_43, %c0_44] : memref<8x72xf32, #tpu.memory_space<vmem>>, vector<8x72xf32>
    %c0_45 = arith.constant 0 : index
    %c0_46 = arith.constant 0 : index
    %88 = vector.load %arg10[%c0_45, %c0_46] : memref<8x1xf32, #tpu.memory_space<vmem>>, vector<8x1xf32>
    %c0_47 = arith.constant 0 : index
    %c17_48 = arith.constant 17 : index
    %89 = vector.load %arg12[%c0_47, %c17_48] : memref<8x290xf32, #tpu.memory_space<vmem>>, vector<8x256xf32>
    tpu.vector_store %arg12[%c0_47, %c17_48], %86 {strides = array<i32>} : memref<8x290xf32, #tpu.memory_space<vmem>>, vector<8x256xf32>,
    %c0_49 = arith.constant 0 : index
    %c0_50 = arith.constant 0 : index
    %90 = vector.load %arg12[%c0_49, %c0_50] : memref<8x290xf32, #tpu.memory_space<vmem>>, vector<8x256xf32>
    %91 = vector.broadcast %20 : vector<1x256xf32> to vector<8x256xf32>
    %92 = arith.mulf %90, %91 : vector<8x256xf32>
    %c0_51 = arith.constant 0 : index
    %c1_52 = arith.constant 1 : index
    %93 = vector.load %arg12[%c0_51, %c1_52] : memref<8x290xf32, #tpu.memory_space<vmem>>, vector<8x256xf32>
    %c0_53 = arith.constant 0 : index
    %c2_54 = arith.constant 2 : index
    %94 = vector.load %arg12[%c0_53, %c2_54] : memref<8x290xf32, #tpu.memory_space<vmem>>, vector<8x256xf32>
    %95 = vector.broadcast %24 : vector<1x256xf32> to vector<8x256xf32>
    %96 = arith.mulf %94, %95 : vector<8x256xf32>
    %c0_55 = arith.constant 0 : index
    %c16_56 = arith.constant 16 : index
    %97 = vector.load %arg12[%c0_55, %c16_56] : memref<8x290xf32, #tpu.memory_space<vmem>>, vector<8x256xf32>
    %98 = vector.broadcast %20 : vector<1x256xf32> to vector<8x256xf32>
    %99 = arith.mulf %97, %98 : vector<8x256xf32>
    %c0_57 = arith.constant 0 : index
    %c17_58 = arith.constant 17 : index
    %100 = vector.load %arg12[%c0_57, %c17_58] : memref<8x290xf32, #tpu.memory_space<vmem>>, vector<8x256xf32>
    %c0_59 = arith.constant 0 : index
    %c18_60 = arith.constant 18 : index
    %101 = vector.load %arg12[%c0_59, %c18_60] : memref<8x290xf32, #tpu.memory_space<vmem>>, vector<8x256xf32>
    %102 = vector.broadcast %24 : vector<1x256xf32> to vector<8x256xf32>
    %103 = arith.mulf %101, %102 : vector<8x256xf32>
    %c0_61 = arith.constant 0 : index
    %c32_62 = arith.constant 32 : index
    %104 = vector.load %arg12[%c0_61, %c32_62] : memref<8x290xf32, #tpu.memory_space<vmem>>, vector<8x256xf32>
    %105 = vector.broadcast %20 : vector<1x256xf32> to vector<8x256xf32>
    %106 = arith.mulf %104, %105 : vector<8x256xf32>
    %c0_63 = arith.constant 0 : index
    %c33_64 = arith.constant 33 : index
    %107 = vector.load %arg12[%c0_63, %c33_64] : memref<8x290xf32, #tpu.memory_space<vmem>>, vector<8x256xf32>
    %c0_65 = arith.constant 0 : index
    %c34_66 = arith.constant 34 : index
    %108 = vector.load %arg12[%c0_65, %c34_66] : memref<8x290xf32, #tpu.memory_space<vmem>>, vector<8x256xf32>
    %109 = vector.broadcast %24 : vector<1x256xf32> to vector<8x256xf32>
    %110 = arith.mulf %108, %109 : vector<8x256xf32>
    %111 = tpu.concatenate %92, %93, %96, %99, %100, %103, %106, %107, %110 in 0 : vector<8x256xf32>, vector<8x256xf32>, vector<8x256xf32>, vector<8x256xf32>, vector<8x256xf32>, vector<8x256xf32>, vector<8x256xf32>, vector<8x256xf32>, vector<8x256xf32> -> vector<72x256xf32>
    %cst_67 = arith.constant dense<0.000000e+00> : vector<8x256xf32>
    %112 = tpu.matmul %87, %111, %cst_67 {dimension_numbers = #tpu.dot_dimension_numbers<[1], [0], [0], [1], [0, 0, 1, 1], [], []>} : vector<8x72xf32>, vector<72x256xf32>, vector<8x256xf32> -> vector<8x256xf32>
    %113 = vector.broadcast %88 : vector<8x1xf32> to vector<8x256xf32>
    %114 = arith.addf %112, %113 : vector<8x256xf32>
    %cst_68 = arith.constant 0.000000e+00 : f32
    %115 = vector.broadcast %cst_68 : f32 to vector<8x256xf32>
    %116 = arith.maximumf %114, %115 : vector<8x256xf32>
    %c0_69 = arith.constant 0 : index
    %c0_70 = arith.constant 0 : index
    %c0_71 = arith.constant 0 : index
    %117 = vector.load %arg11[%c0_69, %c0_70, %c0_71] : memref<1x8x256xf32, #tpu.memory_space<vmem>>, vector<1x8x256xf32>
    %118 = vector.shape_cast %117 : vector<1x8x256xf32> to vector<8x256xf32>
    %119 = vector.shape_cast %116 : vector<8x256xf32> to vector<1x8x256xf32>
    tpu.vector_store %arg11[%c0_69, %c0_70, %c0_71], %119 {strides = array<i32>} : memref<1x8x256xf32, #tpu.memory_space<vmem>>, vector<1x8x256xf32>,
    return
  }
  func.func @transform_0(%arg0: i32) -> (i32, i32, i32) {
    %c0_i32 = arith.constant 0 : i32
    %c0_i32_0 = arith.constant 0 : i32
    %c0_i32_1 = arith.constant 0 : i32
    return %arg0, %c0_i32, %c0_i32_0 : i32, i32, i32
  }
  func.func @transform_1(%arg0: i32) -> (i32, i32, i32) {
    %c0_i32 = arith.constant 0 : i32
    %c0_i32_0 = arith.constant 0 : i32
    %c0_i32_1 = arith.constant 0 : i32
    return %arg0, %c0_i32, %c0_i32_0 : i32, i32, i32
  }
  func.func @transform_2(%arg0: i32) -> (i32, i32) {
    %c0_i32 = arith.constant 0 : i32
    %c0_i32_0 = arith.constant 0 : i32
    %c0_i32_1 = arith.constant 0 : i32
    return %c0_i32, %c0_i32_0 : i32, i32
  }
  func.func @transform_3(%arg0: i32) -> (i32, i32) {
    %c0_i32 = arith.constant 0 : i32
    %c0_i32_0 = arith.constant 0 : i32
    %c0_i32_1 = arith.constant 0 : i32
    return %c0_i32, %c0_i32_0 : i32, i32
  }
  func.func @transform_4(%arg0: i32) -> (i32, i32) {
    %c0_i32 = arith.constant 0 : i32
    %c0_i32_0 = arith.constant 0 : i32
    %c0_i32_1 = arith.constant 0 : i32
    return %c0_i32, %c0_i32_0 : i32, i32
  }
  func.func @transform_5(%arg0: i32) -> (i32, i32) {
    %c0_i32 = arith.constant 0 : i32
    %c0_i32_0 = arith.constant 0 : i32
    %c0_i32_1 = arith.constant 0 : i32
    return %c0_i32, %c0_i32_0 : i32, i32
  }
  func.func @transform_6(%arg0: i32) -> (i32, i32) {
    %c0_i32 = arith.constant 0 : i32
    %c0_i32_0 = arith.constant 0 : i32
    %c0_i32_1 = arith.constant 0 : i32
    return %c0_i32, %c0_i32_0 : i32, i32
  }
  func.func @transform_7(%arg0: i32) -> (i32, i32) {
    %c0_i32 = arith.constant 0 : i32
    %c0_i32_0 = arith.constant 0 : i32
    %c0_i32_1 = arith.constant 0 : i32
    return %c0_i32, %c0_i32_0 : i32, i32
  }
  func.func @transform_8(%arg0: i32) -> (i32, i32) {
    %c0_i32 = arith.constant 0 : i32
    %c0_i32_0 = arith.constant 0 : i32
    %c0_i32_1 = arith.constant 0 : i32
    return %c0_i32, %c0_i32_0 : i32, i32
  }
  func.func @transform_9(%arg0: i32) -> (i32, i32) {
    %c0_i32 = arith.constant 0 : i32
    %c0_i32_0 = arith.constant 0 : i32
    %c0_i32_1 = arith.constant 0 : i32
    return %c0_i32, %c0_i32_0 : i32, i32
  }
  func.func @transform_10(%arg0: i32) -> (i32, i32, i32) {
    %c0_i32 = arith.constant 0 : i32
    %c0_i32_0 = arith.constant 0 : i32
    %c0_i32_1 = arith.constant 0 : i32
    return %arg0, %c0_i32, %c0_i32_0 : i32, i32, i32
  }
}

</mosaic_0001>

<bundles_post_ra>
// kernel: fast_guide_forward.1
= control target key start
LH: loop header
LB: loop body
LE: loop exit
PB: predicated region body
PF: predicated region fallthrough
CT: control target
= control target key end

     0   :  { %s1466_s13 = smov 0   ;;  %s1723_s0 = inlined_call_operand.vmem [shape: f32[2,8,256], index: 0, kind: input, shape index: {}]   ;;  %s1724_s1 = inlined_call_operand.vmem [shape: f32[2,8,256], index: 1, kind: input, shape index: {}]   ;;  %s1725_s2 = inlined_call_operand.vmem [shape: f32[8,72], index: 2, kind: input, shape index: {}]   ;;  %s1726_s3 = inlined_call_operand.vmem [shape: f32[8,1], index: 3, kind: input, shape index: {}]   ;;  %s1727_s4 = inlined_call_operand.vmem [shape: f32[24,8], index: 4, kind: input, shape index: {}]   ;;  %s1728_s5 = inlined_call_operand.vmem [shape: f32[24,1], index: 5, kind: input, shape index: {}]   ;;  %s1729_s6 = inlined_call_operand.vmem [shape: f32[8,8], index: 6, kind: input, shape index: {}]   ;;  %s1730_s7 = inlined_call_operand.vmem [shape: f32[8,1], index: 7, kind: input, shape index: {}]   ;;  %s1731_s8 = inlined_call_operand.vmem [shape: f32[8,72], index: 8, kind: input, shape index: {}]   ;;  %s1732_s9 = inlined_call_operand.vmem [shape: f32[8,1], index: 9, kind: input, shape index: {}]   ;;  %s1733_s10 = inlined_call_operand.vmem [shape: f32[2,8,256], index: 10, kind: output, shape index: {}]  }
   0x1 LB: > { %s1208_s14 = sadd.s32 4294967295, %s1393_s13   ;;  %p1212_p0 = scmp.ge.s32.totalorder %s1393_s13, 1  ;;  %s1393_s13 = sphi %s1466_s13, %s20_s13  }
   0x2   : > { %p322_p1 = scmp.lt.s32.totalorder %s1393_s13, 3 }
   0x4   : > { %p323_p2 = pnand %p1212_p0, %p322_p1 }
   0x5   : > { %p365_p3 = scmp.lt.s32.totalorder (!%p323_p2), %s1208_s14, 1  ;;  %v380_v0 = vlaneseq (!%p323_p2)  ;;  %vm421_vm0 = vcmask (!%p323_p2), 277504   ;;  %v1395_v1 = vmov (!%p323_p2), 0.0   ;;  %s1396_s19 = smov (!%p323_p2), 17   ;;  %vm440_vm5 = vcmask (!%p323_p2), 1047688   ;;  %v428_v59 = vld [vmem:[%s1726_s3] sm:$0xff] (!%p323_p2) }
   0x6   : > { %326 = sbr.rel (%p323_p2) target bundleno = 1451 (0x5ab), region = 60  ;;  %419 = vst [vmem:[#allocation2] sm:$0xff] (!%p323_p2), %v1395_v1  ;;  %422 = vst.msk [vmem:[#allocation2 + $0x10] sm:$0xff] (!%p323_p2), %vm421_vm0, %v1395_v1  ;;  %691 = vmatprep.mubr.f32.mxu0 (!%p323_p2), %v1395_v1  ;;  %795 = vmatprep.mubr.f32.mxu1 (!%p323_p2), %v1395_v1  ;;  %s1397_s20 = smov (!%p323_p2), 2   ;;  %vm435_vm6 = vcmask (!%p323_p2), 138240   ;;  %vm469_vm7 = vcmask (!%p323_p2), 130048  }
   0x7   : > { %v381_v2 = vand.u32 (!%p323_p2), 127, %v380_v0  ;;  %s1398_s21 = smov (!%p323_p2), 18   ;;  %s1399_s22 = smov (!%p323_p2), 16   ;;  %vm481_vm8 = vcmask (!%p323_p2), 146432   ;;  %vm455_vm9 = vcmask (!%p323_p2), 15360   ;;  %vm493_vm10 = vcmask (!%p323_p2), 261120  }
   0x8   : > { %s1400_s23 = smov (!%p323_p2), 34   ;;  %s1401_s24 = smov (!%p323_p2), 32   ;;  %v1409_v56 = vmov (!%p323_p2), 0   ;;  %v705_v61 = vld [vmem:[%s1728_s5 + $0x10] sm:$0xff] (!%p323_p2)  ;;  %vm521_vm11 = vcmask (!%p323_p2), 1039360   ;;  %vm549_vm12 = vcmask (!%p323_p2), 916480  }
   0x9   : > { %v382_v3 = vadd.s32 (!%p323_p2), 128, %v381_v2  ;;  %v387_v4 = vand.u32 (!%p323_p2), 15, %v381_v2  ;;  %s1402_s25 = smov (!%p323_p2), 111   ;;  %s1403_s26 = smov (!%p323_p2), 127   ;;  %1351 = vset.pattern.permute.xlu1 (!%p323_p2), %v1409_v56  ;;  %1350 = vset.pattern.permute.xlu0 (!%p323_p2), %v1409_v56  ;;  %vm535_vm13 = vcmask (!%p323_p2), 1031168   ;;  %vm574_vm14 = vcmask (!%p323_p2), 900096  }
   0xa   : > { %s1404_s27 = smov (!%p323_p2), 112   ;;  %s1405_s28 = smov (!%p323_p2), 110   ;;  %vm560_vm15 = vcmask (!%p323_p2), 908288  }
   0xb   : > { %v394_v6 = vand.u32 (!%p323_p2), 15, %v382_v3  ;;  %vm407_vm1 = vcmp.ge.s32.totalorder (!%p323_p2), %v387_v4, 1  ;;  %vm413_vm2 = vcmp.le.s32.totalorder (!%p323_p2), %v387_v4, 14  ;;  %s1406_s29 = smov (!%p323_p2), 126   ;;  %s1407_s30 = smov (!%p323_p2), 95  }
   0xc   : > { %v1221_v7 = vsel (!%p323_p2), %vm413_vm2, 1.0, %v1395_v1  ;;  %v1489_v10 = vsel (!%p323_p2), %vm407_vm1, 1.0, %v1395_v1  ;;  %s1408_s11 = smov (!%p323_p2), 96   ;;  %s1410_s12 = smov (!%p323_p2), 94   ;;  %vm588_vm1 = vcmask (!%p323_p2), 785408   ;;  %vm613_vm2 = vcmask (!%p323_p2), 769024  }
   0xd   : > { %s1735_s14 = smov (!%p365_p3, %s1208_s14), 1  ;;  %vm414_vm3 = vcmp.le.s32.totalorder %v394_v6, 14  ;;  %vm408_vm4 = vcmp.ge.s32.totalorder %v394_v6, 1 }
   0xe   : > { %s1479_s15 = sshll.u32 %s1735_s14, 4  ;;  %v1222_v9 = vsel %vm414_vm3, 1.0, %v1395_v1  ;;  %v1492_v11 = vsel %vm408_vm4, 1.0, %v1395_v1  ;;  %vm623_vm3 = vcmask 588800   ;;  %vm721_vm4 = vcmask 64512  }
   0xf   : > { %s374_s18 = scalar_lea.vmem %s1724_s1, %s1479_s15  ;;  %v1290_v12 = vpack.i.bf16 %v1222_v9, %v1221_v7  ;;  %v1295_v13 = vpack.i.bf16 %v1492_v11, %v1489_v10  ;;  %s369_s17 = scalar_lea.vmem %s1723_s0, %s1479_s15 }
  0x10   : > { %v425_v5 = vld [vmem:[%s374_s18] sm:$0xff]  ;;  %v426_v8 = vld [vmem:[%s374_s18 + $0x8] sm:$0xff] }
  0x11   : > { %431 = vrot.lane.b32.xlu0 %v425_v5, %s1396_s19  ;;  %1291 = vrot.lane.b32.xlu1 %v1290_v12, %s1397_s20 }
  0x15   : > { %433 = vrot.lane.b32.xlu0 %v426_v8, %s1396_s19  ;;  %1296 = vrot.lane.b32.xlu1 %v1295_v13, %s1399_s22 }
  0x19   : > { %1301 = vrot.lane.b32.xlu0 %v1290_v12, %s1398_s21  ;;  %1306 = vrot.lane.b32.xlu1 %v1295_v13, %s1401_s24 }
  0x1d   : > { %1311 = vrot.lane.b32.xlu0 %v1290_v12, %s1400_s23 }
  0x83   : > { %v432_v14 = vpop.permute.xlu0 %431  ;;  %v1292_v16 = vpop.permute.xlu1 %1291 }
  0x84   : > { %441 = vst.msk [vmem:[#allocation2] sm:$0xff] %vm440_vm5, %v432_v14  ;;  %v1524_v29 = vunpack.i.h.bf16 %v1292_v16  ;;  %v1527_v30 = vunpack.i.l.bf16 %v1292_v16 }
  0x86   : > { %v1542_v36 = vsel %vm455_vm9, %v1527_v30, %v1524_v29 }
  0x87   : > { %v434_v15 = vpop.permute.xlu0 %433  ;;  %v1297_v19 = vpop.permute.xlu1 %1296 }
  0x88   : > { %443 = vst.msk [vmem:[#allocation2 + $0x10] sm:$0xff] %vm435_vm6, %v434_v15  ;;  %v1505_v20 = vunpack.i.h.bf16 %v1297_v19  ;;  %v1507_v21 = vunpack.i.l.bf16 %v1297_v19  ;;  %v1510_v22 = vsel %vm435_vm6, %v432_v14, %v434_v15 }
  0x89   : > { %v461_v44 = vmul.f32 %v1542_v36, %v1510_v22  ;;  %v447_v5 = vmul.f32 %v1492_v11, %v1510_v22 }
  0x8a   : > { %v1520_v27 = vsel %vm469_vm7, %v1507_v21, %v1505_v20 }
  0x8b   : > { %v1499_v17 = vld [vmem:[#allocation2] sm:$0xff]  ;;  %v1302_v18 = vpop.permute.xlu0 %1301  ;;  %v475_v32 = vmul.f32 %v1520_v27, %v1510_v22  ;;  %v1307_v35 = vpop.permute.xlu1 %1306 }
  0x8c   : > { %554 = vrot.lane.b32.xlu1 %v1499_v17, %s1402_s25  ;;  %515 = vrot.lane.b32.xlu0 %v1499_v17, %s1403_s26  ;;  %v1512_v23 = vunpack.i.l.bf16 %v1302_v18  ;;  %v474_v24 = vmul.f32 %v1507_v21, %v1499_v17  ;;  %v1516_v26 = vunpack.i.h.bf16 %v1302_v18  ;;  %v460_v40 = vmul.f32 %v1527_v30, %v1499_v17 }
  0x8d   : > { %v1550_v42 = vunpack.i.h.bf16 %v1307_v35  ;;  %v1552_v43 = vunpack.i.l.bf16 %v1307_v35  ;;  %v446_v6 = vmul.f32 %v1489_v10, %v1499_v17 }
  0x8e   : > { %v486_v31 = vmul.f32 %v1512_v23, %v1499_v17  ;;  %v1536_v34 = vsel %vm481_vm8, %v1512_v23, %v1516_v26 }
  0x8f   : > { %v448_v25 = vld [vmem:[#allocation2 + $0x10] sm:$0xff]  ;;  %v487_v38 = vmul.f32 %v1536_v34, %v1510_v22  ;;  %v1560_v47 = vsel %vm493_vm10, %v1552_v43, %v1550_v42  ;;  %v1312_v48 = vpop.permute.xlu0 %1311  ;;  %v498_v49 = vmul.f32 %v1552_v43, %v1499_v17 }
  0x90   : > { %v1315_v28 = vpack.i.bf16 %v448_v25, %v1510_v22  ;;  %543 = vrot.lane.b32.xlu0 %v474_v24, %s1404_s27  ;;  %v476_v33 = vmul.f32 %v1505_v20, %v448_v25  ;;  %v488_v39 = vmul.f32 %v1516_v26, %v448_v25  ;;  %v462_v41 = vmul.f32 %v1524_v29, %v448_v25 }
  0x91   : > { %v499_v50 = vmul.f32 %v1560_v47, %v1510_v22  ;;  %v500_v51 = vmul.f32 %v1550_v42, %v448_v25  ;;  %v1569_v52 = vunpack.i.h.bf16 %v1312_v48  ;;  %v1571_v53 = vunpack.i.l.bf16 %v1312_v48 }
  0x92   : > { %1316 = vrot.lane.b32.xlu1 %v1315_v28, %s1403_s26  ;;  %v1330_v37 = vpack.i.bf16 %v476_v33, %v475_v32  ;;  %v1335_v45 = vpack.i.bf16 %v488_v39, %v487_v38  ;;  %v1325_v46 = vpack.i.bf16 %v462_v41, %v461_v44 }
  0x93   : > { %v1345_v54 = vpack.i.bf16 %v500_v51, %v499_v50  ;;  %v1580_v55 = vsel %vm421_vm0, %v1571_v53, %v1569_v52  ;;  %v511_v57 = vmul.f32 %v1569_v52, %v448_v25  ;;  %v509_v60 = vmul.f32 %v1571_v53, %v1499_v17 }
  0x94   : > { %568 = vrot.lane.b32.xlu0 %v486_v31, %s1405_s28  ;;  %v510_v58 = vmul.f32 %v1580_v55, %v1510_v22  ;;  %vm599_vm0 = vcmask 777216  }
  0x96   : > { %1321 = vrot.lane.b32.xlu1 %v1315_v28, %s1402_s25 }
  0x98   : > { %1331 = vrot.lane.b32.xlu0 %v1330_v37, %s1404_s27 }
  0x9a   : > { %529 = vrot.lane.b32.xlu1 %v460_v40, %s1406_s29 }
  0x9c   : > { %1336 = vrot.lane.b32.xlu0 %v1335_v45, %s1405_s28 }
  0x9e   : > { %1326 = vrot.lane.b32.xlu1 %v1325_v46, %s1406_s29 }
  0xa0   : > { %1341 = vrot.lane.b32.xlu0 %v1315_v28, %s1407_s30 }
  0xa2   : > { %582 = vrot.lane.b32.xlu1 %v498_v49, %s1408_s11 }
  0xa4   : > { %593 = vrot.lane.b32.xlu0 %v1499_v17, %s1407_s30 }
  0xa6   : > { %1346 = vrot.lane.b32.xlu1 %v1345_v54, %s1408_s11 }
  0xa8   : > { %611 = vrot.lane.b32.xlu0 %v511_v57, %s1410_s12 }
  0xaa   : > { %609 = vrot.lane.b32.xlu1 %v510_v58, %s1410_s12 }
  0xac   : > { %620 = vperm.xlu0 %1350, %v428_v59  }
  0xae   : > { %607 = vrot.lane.b32.xlu1 %v509_v60, %s1410_s12 }
  0xb0   : > { %718 = vperm.xlu0 %1350, %v705_v61  }
  0xfe   : > { %v516_v62 = vpop.permute.xlu0 %515  ;;  %v555_v63 = vpop.permute.xlu1 %554 }
 0x102   : > { %v544_v0 = vpop.permute.xlu0 %543 }
 0x104   : > { %v1317_v2 = vpop.permute.xlu1 %1316 }
 0x105   : > { %v1319_v3 = vunpack.i.h.bf16 %v1317_v2  ;;  %v1318_v4 = vunpack.i.l.bf16 %v1317_v2 }
 0x106   : > { %v569_v7 = vpop.permute.xlu0 %568 }
 0x107   : > { %v523_v8 = vsel %vm521_vm11, %v1318_v4, %v1319_v3  ;;  %v522_v9 = vsel %vm521_vm11, %v516_v62, %v1318_v4 }
 0x108   : > { %v1322_v12 = vpop.permute.xlu1 %1321  ;;  %v1234_v13 = vpack.c.bf16 %v523_v8, %v447_v5  ;;  %v1236_v14 = vpack.c.bf16 %v522_v9, %v446_v6 }
 0x109   : > { %v1324_v17 = vunpack.i.h.bf16 %v1322_v12  ;;  %v1323_v31 = vunpack.i.l.bf16 %v1322_v12  ;;  %v427_v12 = vld [vmem:[%s1725_s2] sm:$0xff] }
 0x10a   : > { %1235 = vmatprep.subr.bf16.mxu0 %v1234_v13  ;;  %v1332_v15 = vpop.permute.xlu0 %1331  ;;  %v703_v13 = vld [vmem:[%s1728_s5] sm:$0xff] }
 0x10b   : > { %1237 = vmatpush1.bf16.msra.mxu0 %v1236_v14  ;;  %v1334_v18 = vunpack.i.h.bf16 %v1332_v15  ;;  %v1333_v19 = vunpack.i.l.bf16 %v1332_v15  ;;  %v562_v48 = vsel %vm560_vm15, %v1323_v31, %v1324_v17  ;;  %v561_v58 = vsel %vm560_vm15, %v555_v63, %v1323_v31  ;;  %708 = vperm.xlu1 %1351, %v703_v13   ;;  %v704_v14 = vld [vmem:[%s1728_s5 + $0x8] sm:$0xff]  ;;  %v841_v15 = vld [vmem:[%s1730_s7] sm:$0xff] }
 0x10c   : > { %v530_v16 = vpop.permute.xlu1 %529  ;;  %v700_v17 = vld [vmem:[%s1727_s4] sm:$0xff]  ;;  %v701_v31 = vld [vmem:[%s1727_s4 + $0x8] sm:$0xff] }
 0x10d   : > { %v551_v35 = vsel %vm549_vm12, %v1333_v19, %v1334_v18  ;;  %v550_v40 = vsel %vm549_vm12, %v544_v0, %v1333_v19 }
 0x10e   : > { %v1337_v24 = vpop.permute.xlu0 %1336 }
 0x10f   : > { %v1339_v22 = vunpack.i.h.bf16 %v1337_v24  ;;  %v1338_v25 = vunpack.i.l.bf16 %v1337_v24  ;;  %713 = vperm.xlu1 %1351, %v704_v14  }
 0x110   : > { %v1327_v28 = vpop.permute.xlu1 %1326 }
 0x111   : > { %v1329_v32 = vunpack.i.h.bf16 %v1327_v28  ;;  %v1328_v33 = vunpack.i.l.bf16 %v1327_v28  ;;  %v576_v41 = vsel %vm574_vm14, %v1338_v25, %v1339_v22  ;;  %v575_v50 = vsel %vm574_vm14, %v569_v7, %v1338_v25 }
 0x112   : > { %v1342_v37 = vpop.permute.xlu0 %1341  ;;  %v1242_v49 = vpack.c.bf16 %v576_v41, %v562_v48  ;;  %v1244_v61 = vpack.c.bf16 %v575_v50, %v561_v58 }
 0x113   : > { %v537_v38 = vsel %vm535_vm13, %v1328_v33, %v1329_v32  ;;  %v536_v39 = vsel %vm535_vm13, %v530_v16, %v1328_v33  ;;  %v1344_v51 = vunpack.i.h.bf16 %v1342_v37  ;;  %v1343_v54 = vunpack.i.l.bf16 %v1342_v37  ;;  %844 = vperm.xlu1 %1351, %v841_v15   ;;  %v702_v32 = vld [vmem:[%s1727_s4 + $0x10] sm:$0xff] }
 0x114   : > { %v583_v44 = vpop.permute.xlu1 %582  ;;  %v1238_v45 = vpack.c.bf16 %v551_v35, %v537_v38  ;;  %v1240_v46 = vpack.c.bf16 %v550_v40, %v536_v39 }
 0x115   : > { %v601_v2 = vsel %vm599_vm0, %v1343_v54, %v1344_v51 }
 0x116   : > { %1239 = vmatprep.subr.bf16.mxu0 %v1238_v45  ;;  %v594_v56 = vpop.permute.xlu0 %593 }
 0x117   : > { %1241 = vmatpush1.bf16.msra.mxu0 %v1240_v46  ;;  %v600_v62 = vsel %vm599_vm0, %v594_v56, %v1343_v54 }
 0x118   : > { %v1347_v57 = vpop.permute.xlu1 %1346  ;;  %1243 = vmatprep.subr.bf16.mxu0 %v1242_v49 }
 0x119   : > { %v1349_v59 = vunpack.i.h.bf16 %v1347_v57  ;;  %v1348_v60 = vunpack.i.l.bf16 %v1347_v57 }
 0x11a   : > { %v612_v4 = vpop.permute.xlu0 %611 }
 0x11b   : > { %1245 = vmatpush1.bf16.msra.mxu0 %v1244_v61  ;;  %v590_v0 = vsel %vm588_vm1, %v1348_v60, %v1349_v59  ;;  %v589_v3 = vsel %vm588_vm1, %v583_v44, %v1348_v60 }
 0x11c   : > { %v610_v5 = vpop.permute.xlu1 %609  ;;  %v1246_v6 = vpack.c.bf16 %v601_v2, %v590_v0  ;;  %v1248_v7 = vpack.c.bf16 %v600_v62, %v589_v3  ;;  %v424_v2 = vld [vmem:[%s369_s17 + $0x8] sm:$0xff] }
 0x11d   : > { %v615_v63 = vsel %vm613_vm2, %v610_v5, %v612_v4  ;;  %v423_v4 = vld [vmem:[%s369_s17] sm:$0xff] }
 0x11e   : > { %1247 = vmatprep.subr.bf16.mxu0 %v1246_v6 }
 0x11f   : > { %1249 = vmatpush1.bf16.msra.mxu0 %v1248_v7  ;;  %v840_v7 = vld [vmem:[%s1729_s6] sm:$0xff] }
 0x120   : > { %v608_v8 = vpop.permute.xlu1 %607  ;;  %643 = vmatprep.subr.mxu0 %v615_v63 }
 0x121   : > { %v614_v9 = vsel %vm613_vm2, %v608_v8, %v610_v5 }
 0x123   : > { %644 = vmatpush1.msra.mxu0 %v614_v9 }
 0x124   : > { %1223 = vmatmul.mubr.msk.f32.vlgmr.msra.gmra.mrb[0].mxu0 %vm623_vm3, %v427_v12 }
 0x125   : > { %914 = vmatprep.mubr.f32.mxu0 %v1395_v1 }
 0x12b   : > { %v621_v16 = vpop.permute.xlu0 %620 }
 0x12f   : > { %v719_v50 = vpop.permute.xlu0 %718 }
 0x18a   : > { %v709_v33 = vpop.permute.xlu1 %708 }
 0x18e   : > { %v714_v39 = vpop.permute.xlu1 %713 }
 0x1f7   : > { %v693_v18 = vpop.f32.mrb[0].mxu0 }
 0x1f8   : > { %v694_v19 = vadd.f32 %v693_v18, %v621_v16  ;;  %v695_v24 = vpop.f32.mrb[1].mxu0 }
 0x1f9   : > { %v696_v22 = vadd.f32 %v695_v24, %v621_v16 }
 0x1fa   : > { %v698_v28 = vmax.f32 %v694_v19, 0.0 }
 0x1fb   : > { %v699_v25 = vmax.f32 %v696_v22, 0.0  ;;  %v845_v22 = vpop.permute.xlu1 %844 }
 0x1fd   : > { %731 = vmatprep.subr.mxu1 %v699_v25 }
 0x1fe   : > { %732 = vmatpush1.msra.mxu1 %v698_v28 }
 0x1ff   : > { %1224 = vmatmul.mubr.msk.f32.vlgmr.msra.gmra.mrb[0].mxu1 %vm721_vm4, %v700_v17 }
 0x200   : > { %801 = vmatprep.mubr.f32.mxu1 %v1395_v1 }
 0x203   : > { %1225 = vmatmul.mubr.msk.f32.gmra.mrb[2].mxu1 %vm721_vm4, %v701_v31 }
 0x204   : > { %807 = vmatprep.mubr.f32.mxu1 %v1395_v1 }
 0x207   : > { %1226 = vmatmul.mubr.msk.f32.gmra.mrb[4].mxu1 %vm721_vm4, %v702_v32 }
 0x208   : > { %1130 = vmatprep.mubr.f32.mxu1 %v1395_v1 }
 0x2d2   : > { %v797_v35 = vpop.f32.mrb[0].mxu1 }
 0x2d3   : > { %v799_v37 = vpop.f32.mrb[1].mxu1  ;;  %v798_v38 = vadd.f32 %v797_v35, %v709_v33 }
 0x2d4   : > { %v800_v40 = vadd.f32 %v799_v37, %v709_v33 }
 0x2d5   : > { %v814_v48 = vmax.f32 %v798_v38, 0.0 }
 0x2d6   : > { %v803_v41 = vpop.f32.mrb[2].mxu1  ;;  %v815_v51 = vmax.f32 %v800_v40, 0.0 }
 0x2d7   : > { %v804_v44 = vadd.f32 %v803_v41, %v714_v39  ;;  %v805_v45 = vpop.f32.mrb[3].mxu1 }
 0x2d8   : > { %v806_v46 = vadd.f32 %v805_v45, %v714_v39 }
 0x2d9   : > { %v816_v49 = vmax.f32 %v804_v44, 0.0 }
 0x2da   : > { %v817_v54 = vmax.f32 %v806_v46, 0.0  ;;  %v809_v56 = vpop.f32.mrb[4].mxu1 }
 0x2db   : > { %v820_v57 = vadd.f32 %v816_v49, %v814_v48  ;;  %v810_v58 = vadd.f32 %v809_v56, %v719_v50  ;;  %v811_v1 = vpop.f32.mrb[5].mxu1 }
 0x2dc   : > { %v821_v59 = vadd.f32 %v817_v54, %v815_v51  ;;  %v812_v60 = vadd.f32 %v811_v1, %v719_v50 }
 0x2dd   : > { %v818_v61 = vmax.f32 %v810_v58, 0.0 }
 0x2de   : > { %v819_v62 = vmax.f32 %v812_v60, 0.0 }
 0x2df   : > { %v822_v0 = vadd.f32 %v820_v57, %v818_v61 }
 0x2e0   : > { %v823_v3 = vadd.f32 %v821_v59, %v819_v62 }
 0x2e1   : > { %v838_v6 = vmul.f32 %v822_v0, %v423_v4  ;;  %v824_v63 = vrot.slane %v822_v0, 4 }
 0x2e2   : > { %v839_v5 = vmul.f32 %v823_v3, %v424_v2  ;;  %v830_v8 = vrot.slane %v823_v3, 4 }
 0x2e3   : > { %v825_v9 = vadd.f32 %v824_v63, %v822_v0 }
 0x2e4   : > { %850 = vmatprep.subr.mxu0 %v839_v5  ;;  %v831_v12 = vadd.f32 %v830_v8, %v823_v3 }
 0x2e5   : > { %851 = vmatpush1.msra.mxu0 %v838_v6  ;;  %v826_v13 = vrot.slane %v825_v9, 2 }
 0x2e6   : > { %1227 = vmatmul.mubr.msk.f32.vlgmr.msra.gmra.mrb[2].mxu0 %vm721_vm4, %v840_v7  ;;  %v832_v14 = vrot.slane %v831_v12, 2 }
 0x2e7   : > { %v827_v15 = vadd.f32 %v826_v13, %v825_v9 }
 0x2e8   : > { %v833_v16 = vadd.f32 %v832_v14, %v831_v12 }
 0x2e9   : > { %v828_v18 = vrot.slane %v827_v15, 1 }
 0x2ea   : > { %v834_v19 = vrot.slane %v833_v16, 1 }
 0x2eb   : > { %v829_v24 = vadd.f32 %v828_v18, %v827_v15 }
 0x2ec   : > { %v835_v28 = vadd.f32 %v834_v19, %v833_v16 }
 0x2ed   : > { %v836_v33 = vmul.f32 0.041666668, %v829_v24 }
 0x2ee   : > { %v837_v37 = vmul.f32 0.041666668, %v835_v28 }
 0x3b9   : > { %v916_v25 = vpop.f32.mrb[2].mxu0 }
 0x3ba   : > { %v917_v17 = vadd.f32 %v916_v25, %v845_v22  ;;  %v918_v31 = vpop.f32.mrb[3].mxu0 }
 0x3bb   : > { %v919_v32 = vadd.f32 %v918_v31, %v845_v22 }
 0x3bc   : > { %v921_v35 = vmax.f32 %v917_v17, 0.0 }
 0x3bd   : > { %v922_v38 = vmax.f32 %v919_v32, 0.0 }
 0x3be   : > { %v923_v39 = vmul.f32 %v921_v35, %v836_v33 }
 0x3bf   : > { %v924_v40 = vmul.f32 %v922_v38, %v837_v37 }
 0x3c0   : > { %929 = vrot.lane.b32.xlu0 %v923_v39, %s1396_s19 }
 0x3c1   : > { %931 = vrot.lane.b32.xlu1 %v924_v40, %s1396_s19 }
 0x432   : > { %v930_v41 = vpop.permute.xlu0 %929 }
 0x433   : > { %937 = vst.msk [vmem:[#allocation2] sm:$0xff] %vm440_vm5, %v930_v41  ;;  %v932_v44 = vpop.permute.xlu1 %931 }
 0x434   : > { %v933_v45 = vsel %vm435_vm6, %v930_v41, %v932_v44  ;;  %939 = vst.msk [vmem:[#allocation2 + $0x10] sm:$0xff] %vm435_vm6, %v932_v44 }
 0x435   : > { %v949_v57 = vmul.f32 %v933_v45, %v1520_v27  ;;  %v943_v3 = vmul.f32 %v1492_v11, %v933_v45 }
 0x43a   : > { %v940_v46 = vld [vmem:[#allocation2] sm:$0xff] }
 0x43b   : > { %999 = vrot.lane.b32.xlu0 %v940_v46, %s1402_s25  ;;  %963 = vrot.lane.b32.xlu1 %v940_v46, %s1403_s26  ;;  %v944_v48 = vld [vmem:[#allocation2 + $0x10] sm:$0xff]  ;;  %v948_v50 = vmul.f32 %v1507_v21, %v940_v46  ;;  %v951_v51 = vmul.f32 %v1512_v23, %v940_v46  ;;  %v945_v54 = vmul.f32 %v1527_v30, %v940_v46 }
 0x43c   : > { %v1352_v49 = vpack.i.bf16 %v944_v48, %v933_v45  ;;  %v950_v56 = vmul.f32 %v1505_v20, %v944_v48  ;;  %v953_v1 = vmul.f32 %v1516_v26, %v944_v48  ;;  %v947_v21 = vmul.f32 %v1524_v29, %v944_v48 }
 0x43d   : > { %v952_v23 = vmul.f32 %v933_v45, %v1536_v34  ;;  %v946_v30 = vmul.f32 %v933_v45, %v1542_v36  ;;  %v954_v27 = vmul.f32 %v1552_v43, %v940_v46  ;;  %v956_v26 = vmul.f32 %v1550_v42, %v944_v48  ;;  %v926_v42 = vld [vmem:[%s1732_s9] sm:$0xff] }
 0x43e   : > { %v1367_v58 = vpack.i.bf16 %v950_v56, %v949_v57  ;;  %v955_v29 = vmul.f32 %v933_v45, %v1560_v47  ;;  %v959_v34 = vmul.f32 %v1569_v52, %v944_v48  ;;  %v958_v36 = vmul.f32 %v933_v45, %v1580_v55 }
 0x43f   : > { %989 = vrot.lane.b32.xlu1 %v948_v50, %s1404_s27  ;;  %1353 = vrot.lane.b32.xlu0 %v1352_v49, %s1403_s26  ;;  %v1372_v20 = vpack.i.bf16 %v953_v1, %v952_v23  ;;  %v1362_v59 = vpack.i.bf16 %v947_v21, %v946_v30  ;;  %v957_v43 = vmul.f32 %v1571_v53, %v940_v46 }
 0x440   : > { %v1382_v60 = vpack.i.bf16 %v956_v26, %v955_v29  ;;  %v942_v55 = vmul.f32 %v1489_v10, %v940_v46  ;;  %v925_v26 = vld [vmem:[%s1731_s8] sm:$0xff] }
 0x443   : > { %1012 = vrot.lane.b32.xlu1 %v951_v51, %s1405_s28  ;;  %976 = vrot.lane.b32.xlu0 %v945_v54, %s1406_s29 }
 0x447   : > { %1358 = vrot.lane.b32.xlu0 %v1352_v49, %s1402_s25  ;;  %1368 = vrot.lane.b32.xlu1 %v1367_v58, %s1404_s27 }
 0x44b   : > { %1373 = vrot.lane.b32.xlu1 %v1372_v20, %s1405_s28  ;;  %1363 = vrot.lane.b32.xlu0 %v1362_v59, %s1406_s29 }
 0x44f   : > { %1378 = vrot.lane.b32.xlu1 %v1352_v49, %s1407_s30  ;;  %1025 = vrot.lane.b32.xlu0 %v954_v27, %s1408_s11 }
 0x453   : > { %1035 = vrot.lane.b32.xlu1 %v940_v46, %s1407_s30  ;;  %1383 = vrot.lane.b32.xlu0 %v1382_v60, %s1408_s11  ;;  %s379_s30 = scalar_lea.vmem %s1733_s10, %s1479_s15 }
 0x457   : > { %1052 = vrot.lane.b32.xlu1 %v959_v34, %s1410_s12  ;;  %1050 = vrot.lane.b32.xlu0 %v958_v36, %s1410_s12 }
 0x45b   : > { %1060 = vperm.xlu1 %1351, %v926_v42   ;;  %1048 = vrot.lane.b32.xlu0 %v957_v43, %s1410_s12 }
 0x4ad   : > { %v1000_v47 = vpop.permute.xlu0 %999  ;;  %v964_v61 = vpop.permute.xlu1 %963 }
 0x4b1   : > { %v990_v62 = vpop.permute.xlu1 %989  ;;  %v1354_v0 = vpop.permute.xlu0 %1353 }
 0x4b2   : > { %v1356_v52 = vunpack.i.h.bf16 %v1354_v0  ;;  %v1355_v2 = vunpack.i.l.bf16 %v1354_v0 }
 0x4b4   : > { %v969_v4 = vsel %vm521_vm11, %v964_v61, %v1355_v2  ;;  %v970_v5 = vsel %vm521_vm11, %v1355_v2, %v1356_v52 }
 0x4b5   : > { %v1252_v6 = vpack.c.bf16 %v969_v4, %v942_v55  ;;  %v1013_v7 = vpop.permute.xlu1 %1012  ;;  %v977_v53 = vpop.permute.xlu0 %976  ;;  %v1250_v63 = vpack.c.bf16 %v970_v5, %v943_v3 }
 0x4b7   : > { %1251 = vmatprep.subr.bf16.mxu1 %v1250_v63 }
 0x4b8   : > { %1253 = vmatpush1.bf16.msra.mxu1 %v1252_v6 }
 0x4b9   : > { %v1359_v8 = vpop.permute.xlu0 %1358  ;;  %v1369_v9 = vpop.permute.xlu1 %1368 }
 0x4ba   : > { %v1370_v12 = vunpack.i.l.bf16 %v1369_v9  ;;  %v1371_v13 = vunpack.i.h.bf16 %v1369_v9  ;;  %v1361_v14 = vunpack.i.h.bf16 %v1359_v8  ;;  %v1360_v15 = vunpack.i.l.bf16 %v1359_v8 }
 0x4bc   : > { %v995_v22 = vsel %vm549_vm12, %v990_v62, %v1370_v12  ;;  %v996_v17 = vsel %vm549_vm12, %v1370_v12, %v1371_v13  ;;  %v1006_v38 = vsel %vm560_vm15, %v1360_v15, %v1361_v14  ;;  %v1005_v45 = vsel %vm560_vm15, %v1000_v47, %v1360_v15 }
 0x4bd   : > { %v1374_v16 = vpop.permute.xlu1 %1373  ;;  %v1364_v10 = vpop.permute.xlu0 %1363 }
 0x4be   : > { %v1376_v18 = vunpack.i.h.bf16 %v1374_v16  ;;  %v1375_v11 = vunpack.i.l.bf16 %v1374_v16  ;;  %v1366_v19 = vunpack.i.h.bf16 %v1364_v10  ;;  %v1365_v24 = vunpack.i.l.bf16 %v1364_v10 }
 0x4c0   : > { %v982_v25 = vsel %vm535_vm13, %v977_v53, %v1365_v24  ;;  %v983_v28 = vsel %vm535_vm13, %v1365_v24, %v1366_v19  ;;  %v1019_v31 = vsel %vm574_vm14, %v1375_v11, %v1376_v18  ;;  %v1018_v39 = vsel %vm574_vm14, %v1013_v7, %v1375_v11 }
 0x4c1   : > { %v1256_v32 = vpack.c.bf16 %v995_v22, %v982_v25  ;;  %v1379_v33 = vpop.permute.xlu1 %1378  ;;  %v1026_v35 = vpop.permute.xlu0 %1025  ;;  %v1254_v37 = vpack.c.bf16 %v996_v17, %v983_v28  ;;  %v1258_v40 = vpack.c.bf16 %v1019_v31, %v1006_v38  ;;  %v1260_v49 = vpack.c.bf16 %v1018_v39, %v1005_v45 }
 0x4c2   : > { %v1381_v41 = vunpack.i.h.bf16 %v1379_v33  ;;  %v1380_v44 = vunpack.i.l.bf16 %v1379_v33 }
 0x4c3   : > { %1255 = vmatprep.subr.bf16.mxu1 %v1254_v37 }
 0x4c4   : > { %1257 = vmatpush1.bf16.msra.mxu1 %v1256_v32  ;;  %v1042_v58 = vsel %vm599_vm0, %v1380_v44, %v1381_v41 }
 0x4c5   : > { %v1036_v46 = vpop.permute.xlu1 %1035  ;;  %v1384_v48 = vpop.permute.xlu0 %1383  ;;  %1259 = vmatprep.subr.bf16.mxu1 %v1258_v40 }
 0x4c6   : > { %v1386_v50 = vunpack.i.h.bf16 %v1384_v48  ;;  %v1385_v51 = vunpack.i.l.bf16 %v1384_v48  ;;  %v1041_v54 = vsel %vm599_vm0, %v1036_v46, %v1380_v44 }
 0x4c8   : > { %v1031_v56 = vsel %vm588_vm1, %v1026_v35, %v1385_v51  ;;  %1261 = vmatpush1.bf16.msra.mxu1 %v1260_v49  ;;  %v1032_v57 = vsel %vm588_vm1, %v1385_v51, %v1386_v50 }
 0x4c9   : > { %v1264_v1 = vpack.c.bf16 %v1041_v54, %v1031_v56  ;;  %v1053_v21 = vpop.permute.xlu1 %1052  ;;  %v1051_v23 = vpop.permute.xlu0 %1050  ;;  %v1262_v30 = vpack.c.bf16 %v1042_v58, %v1032_v57 }
 0x4ca   : > { %v1055_v20 = vsel %vm613_vm2, %v1051_v23, %v1053_v21 }
 0x4cb   : > { %1263 = vmatprep.subr.bf16.mxu1 %v1262_v30 }
 0x4cc   : > { %1265 = vmatpush1.bf16.msra.mxu1 %v1264_v1 }
 0x4cd   : > { %v1049_v59 = vpop.permute.xlu0 %1048  ;;  %1082 = vmatprep.subr.mxu1 %v1055_v20 }
 0x4ce   : > { %v1054_v27 = vsel %vm613_vm2, %v1049_v59, %v1051_v23 }
 0x4d0   : > { %1083 = vmatpush1.msra.mxu1 %v1054_v27 }
 0x4d1   : > { %1228 = vmatmul.mubr.msk.f32.vlgmr.msra.gmra.mrb[6].mxu1 %vm623_vm3, %v925_v26 }
 0x4da   : > { %v1061_v29 = vpop.permute.xlu1 %1060 }
 0x5a4   : > { %v1132_v60 = vpop.f32.mrb[6].mxu1 }
 0x5a5   : > { %v1133_v34 = vadd.f32 %v1132_v60, %v1061_v29  ;;  %v1134_v36 = vpop.f32.mrb[7].mxu1 }
 0x5a6   : > { %v1135_v42 = vadd.f32 %v1134_v36, %v1061_v29 }
 0x5a7   : > { %v1137_v43 = vmax.f32 %v1133_v34, 0.0 }
 0x5a8   : > { %v1138_v47 = vmax.f32 %v1135_v42, 0.0 }
 0x5a9   : > { %1139 = vst [vmem:[%s379_s30] sm:$0xff] %v1137_v43 }
 0x5aa   : > { %1140 = vst [vmem:[%s379_s30 + $0x8] sm:$0xff] %v1138_v47 }
 0x5ab PF: > { %s20_s13 = sadd.s32 1, %s1393_s13  }
 0x5ac   : > { %p17_p4 = scmp.ge.s32.totalorder %s20_s13, 4  }
 0x5ae   :  { %19 = sbr.rel (!%p17_p4) target bundleno = 1 (0x1), region = 93 }

</bundles_post_ra>
